<compile_context>
chip_gen: v7x
topology: tpu7x:2x2x1
jax: 0.10.0
libtpu: 0.0.40
codegen_flags: <defaults>
</compile_context>

<pallas_src>
import functools

import jax
import jax.numpy as jnp
from jax.experimental import pallas as pl
from jax.experimental.pallas import tpu as pltpu

PAD = 0        # Constants.PAD
LANE = 128     # TPU lane width; per-head padded output width


# ---------------------------------------------------------------------------
# Fused Pallas kernel (one grid step == one (sent_level_fea, acts) sample)
#   row 0          : act head   = sigmoid(relu(fea @ a_w1 + a_b1) @ a_w2 + a_b2)
#   rows 1..n_acts : slot head  = sigmoid(relu(emb(act) @ s_w1e + fea @ s_w1f + s_b1) @ s_w2 + s_b2)
# ---------------------------------------------------------------------------
def _fused_decoder_kernel(acts_ref, fea_ref, w1_ref, b1_ref, w2_ref, b2_ref, out_ref):
    f32 = jnp.float32
    bf16 = jnp.bfloat16
    rows = out_ref.shape[0]                       # padded row count (multiple of 8)
    two_d = fea_ref.shape[1]                      # 2 * d_model
    vocab = w1_ref.shape[0] - 2 * two_d           # act vocab size

    acts = acts_ref[...]                          # (rows, 1) int32; row 0 / pad rows carry PAD
    row_id = jax.lax.broadcasted_iota(jnp.int32, (rows, 1), 0)
    is_row0 = row_id == 0                         # (rows, 1) bool, reused for every select

    # one-hot over the act vocab (row 0 masked -> act head gets no embedding contribution)
    # NOTE: an act index >= vocab silently yields an all-zero row (zero embedding).
    lane_id = jax.lax.broadcasted_iota(jnp.int32, (rows, vocab), 1)
    one_hot = ((lane_id == acts) & (row_id != 0)).astype(f32).astype(bf16)   # (rows, vocab)

    fea = fea_ref[...]                            # (1, two_d) f32
    m0 = is_row0.astype(f32)                      # (rows, 1) f32
    fea_act = (fea * m0).astype(bf16)             # (rows, two_d): fea on row 0, zeros elsewhere
    fea_slot = (fea * (1.0 - m0)).astype(bf16)    # (rows, two_d): fea on rows >= 1

    # ---- layer 1: single bf16 MXU push for all rows ----
    # X @ [emb_w1 ; a_w1 ; s_w1_fea]  ->  row 0: fea@a_w1 ; rows>=1: emb_w1[act] + fea@s_w1f
    x = jnp.concatenate([one_hot, fea_act, fea_slot], axis=1)        # (rows, vocab + 2*two_d)
    h = jnp.dot(x, w1_ref[...], preferred_element_type=f32)          # (rows, emb) f32 acc
    b1 = jnp.where(is_row0, b1_ref[0:1, :], b1_ref[1:2, :])          # f32 per-row bias
    h = jnp.maximum(h + b1, 0.0)                                     # f32 ReLU

    # ---- layer 2: single bf16 MXU push for both heads ([a_w2 | s_w2], each padded to 128) ----
    y = jnp.dot(h.astype(bf16), w2_ref[...], preferred_element_type=f32) + b2_ref[...]
    out_ref[...] = jax.nn.sigmoid(y)              # (rows, 256) f32, lane-dense unmasked store


def _fused_call(acts_pad, fea, packed):
    """acts_pad: (B, rows, 1) int32 ; fea: (B, 1, 2*d_model) f32  ->  (B, rows, 2*LANE) f32."""
    B, rows, _ = acts_pad.shape
    w1, b1, w2, b2 = packed["w1_stack"], packed["b1_pair"], packed["w2_cat"], packed["b2_cat"]
    emb = w1.shape[1]

    def per_sample(shape):
        tail = tuple(int(s) for s in shape[1:])
        zeros = (0,) * len(tail)
        return pl.BlockSpec((pl.Squeezed(),) + tail, lambda b, _z=zeros: (b,) + _z)

    def resident(arr):   # full-array block, constant index_map -> loaded once, stays in VMEM
        zeros = (0,) * arr.ndim
        return pl.BlockSpec(arr.shape, lambda b, _z=zeros: _z)

    flops = 2 * B * rows * (w1.shape[0] * emb + emb * w2.shape[1])
    bytes_accessed = (sum(int(a.size) * a.dtype.itemsize for a in (w1, b1, w2, b2))
                      + int(acts_pad.size) * 4 + int(fea.size) * 4
                      + B * rows * 2 * LANE * 4)

    return pl.pallas_call(
        _fused_decoder_kernel,
        grid=(B,),
        out_shape=jax.ShapeDtypeStruct((B, rows, 2 * LANE), jnp.float32),
        in_specs=[per_sample(acts_pad.shape), per_sample(fea.shape),
                  resident(w1), resident(b1), resident(w2), resident(b2)],
        out_specs=per_sample((B, rows, 2 * LANE)),
        compiler_params=pltpu.CompilerParams(dimension_semantics=("parallel",)),
        cost_estimate=pl.CostEstimate(flops=flops,
                                      transcendentals=B * rows * 2 * LANE,
                                      bytes_accessed=bytes_accessed),
    )(acts_pad, fea, w1, b1, w2, b2)


# ---------------------------------------------------------------------------
# Parameter construction (mirrors module __init__ shapes) + kernel packing
# ---------------------------------------------------------------------------
def init_params(key, *, act_vocab_size, slot_vocab_size, emb_size, d_model):
    ks = jax.random.split(key, 6)

    def lin(k, d_in, d_out):
        kw, kb = jax.random.split(k)
        scale = 1.0 / jnp.sqrt(d_in)
        # stored as (in, out) == transposed PyTorch Linear weight
        w = jax.random.uniform(kw, (d_in, d_out), jnp.float32, -scale, scale)
        b = jax.random.uniform(kb, (1, d_out), jnp.float32, -scale, scale)
        return w, b

    act_emb = jax.random.normal(ks[0], (act_vocab_size, emb_size), jnp.float32)
    act_emb = act_emb.at[PAD].set(0.0)        # padding_idx=PAD
    slot_emb = jax.random.normal(ks[1], (slot_vocab_size, emb_size), jnp.float32)
    slot_emb = slot_emb.at[PAD].set(0.0)

    # act_clf: MultiClassifier(2*d_model, emb_size, act_vocab_size)
    a_w1, a_b1 = lin(ks[2], 2 * d_model, emb_size)
    a_w2, a_b2 = lin(ks[3], emb_size, act_vocab_size)
    # slot_clf: MultiClassifier(2*d_model + emb_size, emb_size, slot_vocab_size)
    s_w1, s_b1 = lin(ks[4], 2 * d_model + emb_size, emb_size)
    s_w2, s_b2 = lin(ks[5], emb_size, slot_vocab_size)

    return dict(act_emb=act_emb, slot_emb=slot_emb,
                act_clf=(a_w1, a_b1, a_w2, a_b2),
                slot_clf=(s_w1, s_b1, s_w2, s_b2))


def pack_params(params):
    """One-time packing into the fused-kernel operand layout.

    w1_stack = [act_emb @ s_w1[:emb] ; a_w1 ; s_w1[emb:]]   (vocab + 4*d_model, emb)  bf16
    b1_pair  = [a_b1 ; s_b1]                                 (2, emb)                  f32
    w2_cat   = [pad128(a_w2) | pad128(s_w2)]                 (emb, 256)                bf16
    b2_cat   = [pad128(a_b2) | pad128(s_b2)]                 (1, 256)                  f32
    """
    emb = params["act_emb"].shape[1]
    a_w1, a_b1, a_w2, a_b2 = params["act_clf"]
    s_w1, s_b1, s_w2, s_b2 = params["slot_clf"]
    s_w1e, s_w1f = s_w1[:emb], s_w1[emb:]

    emb_w1 = params["act_emb"] @ s_w1e            # pre-fused in f32, then rounded once to bf16

    def pad_cols(w):
        return jnp.pad(w, ((0, 0), (0, LANE - w.shape[1])))

    return dict(
        w1_stack=jnp.concatenate([emb_w1, a_w1, s_w1f], axis=0).astype(jnp.bfloat16),
        b1_pair=jnp.concatenate([a_b1, s_b1], axis=0).astype(jnp.float32),
        w2_cat=jnp.concatenate([pad_cols(a_w2), pad_cols(s_w2)], axis=1).astype(jnp.bfloat16),
        b2_cat=jnp.concatenate([pad_cols(a_b2), pad_cols(s_b2)], axis=1).astype(jnp.float32),
    )


def _pad_rows(n_acts):
    return max(8, -(-(1 + n_acts) // 8) * 8)      # sublane-aligned output row count


# ---------------------------------------------------------------------------
# TransHierarDecoder.forward (batch_size = 1, act_slot_pairs=None path)
# ---------------------------------------------------------------------------
@functools.partial(jax.jit, static_argnames=("act_vocab", "slot_vocab"))
def trans_hierar_decoder_forward(packed, sent_level_fea, acts, *, act_vocab, slot_vocab):
    """
    sent_level_fea : (1, 2*d_model) float32
    acts           : (#acts, 1) int32 or None
    returns (act_scores, slot_scores, value_scores=None)
    """
    n_acts = 0 if acts is None else acts.shape[0]
    rows = _pad_rows(n_acts)

    if acts is None:
        acts_pad = jnp.zeros((1, rows, 1), jnp.int32)
    else:
        # row 0 is reserved for the act head; rows 1..n_acts carry the act indices
        acts_pad = jnp.pad(acts.astype(jnp.int32).reshape(1, -1, 1),
                           ((0, 0), (1, rows - 1 - n_acts), (0, 0)), constant_values=PAD)

    out = _fused_call(acts_pad, sent_level_fea.reshape(1, 1, -1), packed)[0]   # (rows, 256)

    act_scores = out[0:1, :act_vocab]
    slot_scores = None if acts is None else out[1:1 + n_acts, LANE:LANE + slot_vocab]
    # TODO(synk): value_scores (pointer Decoder) omitted — Decoder source not provided.
    return act_scores, slot_scores, None


@functools.partial(jax.jit, static_argnames=("act_vocab", "slot_vocab"))
def trans_hierar_decoder_forward_batched(packed, sent_level_fea, acts, *, act_vocab, slot_vocab):
    """
    Batched variant: one pallas_call over B samples (parallel grid axis -> both TCs on v7x).
    sent_level_fea : (B, 2*d_model) float32
    acts           : (B, n_acts, 1) int32 (use PAD for missing acts; those slot rows are junk)
    """
    B, n_acts = acts.shape[0], acts.shape[1]
    rows = _pad_rows(n_acts)
    acts_pad = jnp.pad(acts.astype(jnp.int32),
                       ((0, 0), (1, rows - 1 - n_acts), (0, 0)), constant_values=PAD)
    out = _fused_call(acts_pad, sent_level_fea[:, None, :], packed)            # (B, rows, 256)
    act_scores = out[:, 0, :act_vocab]
    slot_scores = out[:, 1:1 + n_acts, LANE:LANE + slot_vocab]
    return act_scores, slot_scores, None


# ---------------------------------------------------------------------------
# Self-check
# ---------------------------------------------------------------------------
if __name__ == "__main__":
    d_model = 32
    emb_size = 16
    act_vocab_size = 12
    slot_vocab_size = 10
    n_acts = 3
    batch = 4

    key = jax.random.PRNGKey(0)
    k_par, k_fea, k_act, k_feab, k_actb = jax.random.split(key, 5)

    params = init_params(k_par, act_vocab_size=act_vocab_size,
                         slot_vocab_size=slot_vocab_size,
                         emb_size=emb_size, d_model=d_model)
    packed = pack_params(params)

    sent_level_fea = jax.random.normal(k_fea, (1, 2 * d_model), jnp.float32)
    acts = jax.random.randint(k_act, (n_acts, 1), 1, act_vocab_size, dtype=jnp.int32)

    # single-sample forward (module's batch_size=1 path)
    act_scores, slot_scores, value_scores = trans_hierar_decoder_forward(
        packed, sent_level_fea, acts,
        act_vocab=act_vocab_size, slot_vocab=slot_vocab_size)
    jax.block_until_ready((act_scores, slot_scores))

    # batched forward (perf path: grid over samples)
    fea_b = jax.random.normal(k_feab, (batch, 2 * d_model), jnp.float32)
    acts_b = jax.random.randint(k_actb, (batch, n_acts, 1), 1, act_vocab_size, dtype=jnp.int32)
    act_b, slot_b, _ = trans_hierar_decoder_forward_batched(
        packed, fea_b, acts_b, act_vocab=act_vocab_size, slot_vocab=slot_vocab_size)
    jax.block_until_ready((act_b, slot_b))

    # ---- pure-JAX reference mirroring the kernel's bf16-rounded operands & cast points ----
    f32 = jnp.float32
    w1_stack = packed["w1_stack"].astype(f32)
    emb_w1 = w1_stack[:act_vocab_size]
    a_w1 = w1_stack[act_vocab_size:act_vocab_size + 2 * d_model]
    s_w1f = w1_stack[act_vocab_size + 2 * d_model:]
    a_b1 = packed["b1_pair"][0:1]
    s_b1 = packed["b1_pair"][1:2]
    w2_cat = packed["w2_cat"].astype(f32)
    b2_cat = packed["b2_cat"]
    a_w2, a_b2 = w2_cat[:, :act_vocab_size], b2_cat[:, :act_vocab_size]
    s_w2 = w2_cat[:, LANE:LANE + slot_vocab_size]
    s_b2 = b2_cat[:, LANE:LANE + slot_vocab_size]

    def ref_forward(fea_1x2d, acts_n1):
        fea_r = fea_1x2d.astype(jnp.bfloat16).astype(f32)
        h_act = jnp.maximum(fea_r @ a_w1 + a_b1, 0.0).astype(jnp.bfloat16).astype(f32)
        ra = jax.nn.sigmoid(h_act @ a_w2 + a_b2)
        emb_part = emb_w1[acts_n1[:, 0]]
        h_slot = jnp.maximum(emb_part + fea_r @ s_w1f + s_b1, 0.0)
        h_slot = h_slot.astype(jnp.bfloat16).astype(f32)
        rs = jax.nn.sigmoid(h_slot @ s_w2 + s_b2)
        return ra, rs

    ref_act, ref_slot = ref_forward(sent_level_fea, acts)

    assert act_scores.shape == (1, act_vocab_size)
    assert slot_scores.shape == (n_acts, slot_vocab_size)
    assert value_scores is None
    assert jnp.allclose(act_scores, ref_act, atol=1e-4, rtol=1e-4)
    assert jnp.allclose(slot_scores, ref_slot, atol=1e-4, rtol=1e-4)

    assert act_b.shape == (batch, act_vocab_size)
    assert slot_b.shape == (batch, n_acts, slot_vocab_size)
    for i in range(batch):
        ra_i, rs_i = ref_forward(fea_b[i:i + 1], acts_b[i])
        assert jnp.allclose(act_b[i:i + 1], ra_i, atol=1e-4, rtol=1e-4)
        assert jnp.allclose(slot_b[i], rs_i, atol=1e-4, rtol=1e-4)

    print("KERNEL_OK")
</pallas_src>

<mosaic_0001>
module attributes {stable_mosaic.version = 11 : i64} {
  func.func @_fused_decoder_kernel(%arg0: i32, %arg1: memref<1x8x1xi32, #tpu.memory_space<vmem>>, %arg2: memref<1x1x64xf32, #tpu.memory_space<vmem>>, %arg3: memref<140x16xbf16, #tpu.memory_space<vmem>>, %arg4: memref<2x16xf32, #tpu.memory_space<vmem>>, %arg5: memref<16x256xbf16, #tpu.memory_space<vmem>>, %arg6: memref<1x256xf32, #tpu.memory_space<vmem>>, %arg7: memref<1x8x256xf32, #tpu.memory_space<vmem>>) attributes {dimension_semantics = [#tpu.dimension_semantics<parallel>], iteration_bounds = array<i64: 1>, scalar_prefetch = 0 : i64, scratch_operands = 0 : i64, tpu.core_type = #tpu.core_type<tc>, window_params = [{transform_indices = @transform_0, window_bounds = array<i64: 1, 8, 1>}, {transform_indices = @transform_1, window_bounds = array<i64: 1, 1, 64>}, {pipeline_mode = #tpu.pipeline_mode<synchronous>, transform_indices = @transform_2, window_bounds = array<i64: 140, 16>}, {pipeline_mode = #tpu.pipeline_mode<synchronous>, transform_indices = @transform_3, window_bounds = array<i64: 2, 16>}, {pipeline_mode = #tpu.pipeline_mode<synchronous>, transform_indices = @transform_4, window_bounds = array<i64: 16, 256>}, {pipeline_mode = #tpu.pipeline_mode<synchronous>, transform_indices = @transform_5, window_bounds = array<i64: 1, 256>}, {transform_indices = @transform_6, window_bounds = array<i64: 1, 8, 256>}]} {
    %c0 = arith.constant 0 : index
    %c0_0 = arith.constant 0 : index
    %c0_1 = arith.constant 0 : index
    %0 = vector.load %arg1[%c0, %c0_0, %c0_1] : memref<1x8x1xi32, #tpu.memory_space<vmem>>, vector<1x8x1xi32>
    %1 = vector.shape_cast %0 : vector<1x8x1xi32> to vector<8x1xi32>
    %2 = tpu.iota {dimensions = array<i32: 0>} : vector<8x1xi32>
    %c0_i32 = arith.constant 0 : i32
    %3 = vector.broadcast %c0_i32 : i32 to vector<8x1xi32>
    %4 = arith.cmpi eq, %2, %3 : vector<8x1xi32>
    %5 = tpu.iota {dimensions = array<i32: 1>} : vector<8x12xi32>
    %6 = vector.broadcast %1 : vector<8x1xi32> to vector<8x12xi32>
    %7 = arith.cmpi eq, %5, %6 : vector<8x12xi32>
    %c0_i32_2 = arith.constant 0 : i32
    %8 = vector.broadcast %c0_i32_2 : i32 to vector<8x1xi32>
    %9 = arith.cmpi ne, %2, %8 : vector<8x1xi32>
    %10 = vector.broadcast %9 : vector<8x1xi1> to vector<8x12xi1>
    %11 = arith.andi %7, %10 : vector<8x12xi1>
    %12 = arith.extui %11 : vector<8x12xi1> to vector<8x12xi32>
    %13 = arith.sitofp %12 : vector<8x12xi32> to vector<8x12xf32>
    %14 = arith.truncf %13 : vector<8x12xf32> to vector<8x12xbf16>
    %c0_3 = arith.constant 0 : index
    %c0_4 = arith.constant 0 : index
    %c0_5 = arith.constant 0 : index
    %15 = vector.load %arg2[%c0_3, %c0_4, %c0_5] : memref<1x1x64xf32, #tpu.memory_space<vmem>>, vector<1x1x64xf32>
    %16 = vector.shape_cast %15 : vector<1x1x64xf32> to vector<1x64xf32>
    %17 = arith.extui %4 : vector<8x1xi1> to vector<8x1xi32>
    %18 = arith.sitofp %17 : vector<8x1xi32> to vector<8x1xf32>
    %19 = vector.broadcast %16 : vector<1x64xf32> to vector<8x64xf32>
    %20 = vector.broadcast %18 : vector<8x1xf32> to vector<8x64xf32>
    %21 = arith.mulf %19, %20 : vector<8x64xf32>
    %22 = arith.truncf %21 : vector<8x64xf32> to vector<8x64xbf16>
    %cst = arith.constant 1.000000e+00 : f32
    %23 = vector.broadcast %cst : f32 to vector<8x1xf32>
    %24 = arith.subf %23, %18 : vector<8x1xf32>
    %25 = vector.broadcast %16 : vector<1x64xf32> to vector<8x64xf32>
    %26 = vector.broadcast %24 : vector<8x1xf32> to vector<8x64xf32>
    %27 = arith.mulf %25, %26 : vector<8x64xf32>
    %28 = arith.truncf %27 : vector<8x64xf32> to vector<8x64xbf16>
    %29 = tpu.concatenate %14, %22, %28 in 1 : vector<8x12xbf16>, vector<8x64xbf16>, vector<8x64xbf16> -> vector<8x140xbf16>
    %c0_6 = arith.constant 0 : index
    %c0_7 = arith.constant 0 : index
    %30 = vector.load %arg3[%c0_6, %c0_7] : memref<140x16xbf16, #tpu.memory_space<vmem>>, vector<140x16xbf16>
    %cst_8 = arith.constant dense<0.000000e+00> : vector<8x16xf32>
    %31 = tpu.matmul %29, %30, %cst_8 {dimension_numbers = #tpu.dot_dimension_numbers<[1], [0], [0], [1], [0, 0, 1, 1], [], []>} : vector<8x140xbf16>, vector<140x16xbf16>, vector<8x16xf32> -> vector<8x16xf32>
    %c0_9 = arith.constant 0 : index
    %c0_10 = arith.constant 0 : index
    %32 = vector.load %arg4[%c0_9, %c0_10] : memref<2x16xf32, #tpu.memory_space<vmem>>, vector<1x16xf32>
    %c1 = arith.constant 1 : index
    %c0_11 = arith.constant 0 : index
    %33 = vector.load %arg4[%c1, %c0_11] : memref<2x16xf32, #tpu.memory_space<vmem>>, vector<1x16xf32>
    %34 = vector.shape_cast %4 : vector<8x1xi1> to vector<8x1xi1>
    %35 = vector.broadcast %34 : vector<8x1xi1> to vector<8x16xi1>
    %36 = vector.shape_cast %32 : vector<1x16xf32> to vector<1x16xf32>
    %37 = vector.broadcast %36 : vector<1x16xf32> to vector<8x16xf32>
    %38 = vector.shape_cast %33 : vector<1x16xf32> to vector<1x16xf32>
    %39 = vector.broadcast %38 : vector<1x16xf32> to vector<8x16xf32>
    %40 = arith.select %35, %37, %39 : vector<8x16xi1>, vector<8x16xf32>
    %41 = arith.addf %31, %40 : vector<8x16xf32>
    %cst_12 = arith.constant 0.000000e+00 : f32
    %42 = vector.broadcast %cst_12 : f32 to vector<8x16xf32>
    %43 = arith.maximumf %41, %42 : vector<8x16xf32>
    %44 = arith.truncf %43 : vector<8x16xf32> to vector<8x16xbf16>
    %c0_13 = arith.constant 0 : index
    %c0_14 = arith.constant 0 : index
    %45 = vector.load %arg5[%c0_13, %c0_14] : memref<16x256xbf16, #tpu.memory_space<vmem>>, vector<16x256xbf16>
    %cst_15 = arith.constant dense<0.000000e+00> : vector<8x256xf32>
    %46 = tpu.matmul %44, %45, %cst_15 {dimension_numbers = #tpu.dot_dimension_numbers<[1], [0], [0], [1], [0, 0, 1, 1], [], []>} : vector<8x16xbf16>, vector<16x256xbf16>, vector<8x256xf32> -> vector<8x256xf32>
    %c0_16 = arith.constant 0 : index
    %c0_17 = arith.constant 0 : index
    %47 = vector.load %arg6[%c0_16, %c0_17] : memref<1x256xf32, #tpu.memory_space<vmem>>, vector<1x256xf32>
    %48 = vector.broadcast %47 : vector<1x256xf32> to vector<8x256xf32>
    %49 = arith.addf %46, %48 : vector<8x256xf32>
    %50 = arith.negf %49 : vector<8x256xf32>
    %51 = math.exp %50 : vector<8x256xf32>
    %cst_18 = arith.constant 1.000000e+00 : f32
    %52 = vector.broadcast %cst_18 : f32 to vector<8x256xf32>
    %53 = arith.addf %52, %51 : vector<8x256xf32>
    %54 = arith.divf %52, %53 : vector<8x256xf32>
    %c0_19 = arith.constant 0 : index
    %c0_20 = arith.constant 0 : index
    %c0_21 = arith.constant 0 : index
    %55 = vector.load %arg7[%c0_19, %c0_20, %c0_21] : memref<1x8x256xf32, #tpu.memory_space<vmem>>, vector<1x8x256xf32>
    %56 = vector.shape_cast %55 : vector<1x8x256xf32> to vector<8x256xf32>
    %57 = vector.shape_cast %54 : vector<8x256xf32> to vector<1x8x256xf32>
    tpu.vector_store %arg7[%c0_19, %c0_20, %c0_21], %57 {strides = array<i32>} : memref<1x8x256xf32, #tpu.memory_space<vmem>>, vector<1x8x256xf32>,
    return
  }
  func.func @transform_0(%arg0: i32) -> (i32, i32, i32) {
    %c0_i32 = arith.constant 0 : i32
    %c0_i32_0 = arith.constant 0 : i32
    %c0_i32_1 = arith.constant 0 : i32
    return %arg0, %c0_i32, %c0_i32_0 : i32, i32, i32
  }
  func.func @transform_1(%arg0: i32) -> (i32, i32, i32) {
    %c0_i32 = arith.constant 0 : i32
    %c0_i32_0 = arith.constant 0 : i32
    %c0_i32_1 = arith.constant 0 : i32
    return %arg0, %c0_i32, %c0_i32_0 : i32, i32, i32
  }
  func.func @transform_2(%arg0: i32) -> (i32, i32) {
    %c0_i32 = arith.constant 0 : i32
    %c0_i32_0 = arith.constant 0 : i32
    %c0_i32_1 = arith.constant 0 : i32
    return %c0_i32, %c0_i32_0 : i32, i32
  }
  func.func @transform_3(%arg0: i32) -> (i32, i32) {
    %c0_i32 = arith.constant 0 : i32
    %c0_i32_0 = arith.constant 0 : i32
    %c0_i32_1 = arith.constant 0 : i32
    return %c0_i32, %c0_i32_0 : i32, i32
  }
  func.func @transform_4(%arg0: i32) -> (i32, i32) {
    %c0_i32 = arith.constant 0 : i32
    %c0_i32_0 = arith.constant 0 : i32
    %c0_i32_1 = arith.constant 0 : i32
    return %c0_i32, %c0_i32_0 : i32, i32
  }
  func.func @transform_5(%arg0: i32) -> (i32, i32) {
    %c0_i32 = arith.constant 0 : i32
    %c0_i32_0 = arith.constant 0 : i32
    %c0_i32_1 = arith.constant 0 : i32
    return %c0_i32, %c0_i32_0 : i32, i32
  }
  func.func @transform_6(%arg0: i32) -> (i32, i32, i32) {
    %c0_i32 = arith.constant 0 : i32
    %c0_i32_0 = arith.constant 0 : i32
    %c0_i32_1 = arith.constant 0 : i32
    return %arg0, %c0_i32, %c0_i32_0 : i32, i32, i32
  }
}

</mosaic_0001>

<bundles_post_ra>
// kernel: trans_hierar_decoder_forward.1
= control target key start
LH: loop header
LB: loop body
LE: loop exit
PB: predicated region body
PF: predicated region fallthrough
CT: control target
= control target key end

     0   :  { %v25_v0 = vlaneseq  ;;  %v332_v1 = vmov 0   ;;  %v333_v7 = vmov 0.0   ;;  %s335_s30 = smov 76   ;;  %vm154_vm1 = vcmask 1045504   ;;  %s435_s0 = inlined_call_operand.vmem [shape: s32[1,8,1], index: 0, kind: input, shape index: {}]   ;;  %s436_s1 = inlined_call_operand.vmem [shape: f32[1,1,64], index: 1, kind: input, shape index: {}]   ;;  %s437_s2 = inlined_call_operand.vmem [shape: bf16[140,16], index: 2, kind: input, shape index: {}]   ;;  %s438_s4 = inlined_call_operand.vmem [shape: bf16[16,256], index: 4, kind: input, shape index: {}]   ;;  %s439_s3 = inlined_call_operand.vmem [shape: f32[2,16], index: 3, kind: input, shape index: {}]   ;;  %s440_s5 = inlined_call_operand.vmem [shape: f32[1,256], index: 5, kind: input, shape index: {}]   ;;  %s441_s6 = inlined_call_operand.vmem [shape: f32[1,8,256], index: 6, kind: output, shape index: {}]  }
   0x1   :  { %311 = vset.pattern.permute.xlu0 %v332_v1  ;;  %v24_v2 = vld [vmem:[%s435_s0] sm:$0xff]  ;;  %158 = vmatprep.subr.bf16.mxu0 %v332_v1  ;;  %v313_v6 = vld [vmem:[%s437_s2 + $0x8] sm:$0xff]   ;;  %v314_v13 = vld [vmem:[%s437_s2 + $0x10] sm:$0xff]   ;;  %vm61_vm2 = vcmask 97280   ;;  %vm65_vm6 = vcmask 621568   ;;  %vm224_vm7 = vcmask 130048  }
   0x2   :  { %31 = vperm.xlu0 %311, %v24_v2   ;;  %v374_v3 = vshrl.u32 %v25_v0, 7  ;;  %v312_v4 = vld [vmem:[%s437_s2] sm:$0xff]   ;;  %260 = vmatprep.mubr.bf16.mxu1 %v332_v1  ;;  %v315_v15 = vld [vmem:[%s437_s2 + $0x18] sm:$0xff]   ;;  %v317_v17 = vld [vmem:[%s437_s2 + $0x28] sm:$0xff]   ;;  %v29_v22 = vand.u32 127, %v25_v0 }
   0x3   :  { %v289_v5 = vld [vmem:[%s436_s1] ss:$0 sm:$0xff]  ;;  %159 = vmatpush1.bf16.msra.mxu0 %v312_v4  ;;  %s334_s1 = smov 12   ;;  %v318_v18 = vld [vmem:[%s437_s2 + $0x30] sm:$0xff]   ;;  %v319_v19 = vld [vmem:[%s437_s2 + $0x38] sm:$0xff]  }
   0x4   :  { %vm27_vm0 = vcmp.eq.s32.totalorder %v374_v3, 0  ;;  %160 = vmatprep.subr.bf16.mxu0 %v332_v1  ;;  %v316_v16 = vld [vmem:[%s437_s2 + $0x20] sm:$0xff]   ;;  %vm34_vm3 = vcmp.ne.s32.totalorder %v374_v3, 0  ;;  %v206_v42 = vsub.s32 0, %v374_v3  ;;  %v210_v44 = vsub.s32 1, %v374_v3 }
   0x5   :  { %v288_v8 = vsel %vm27_vm0, 1.0, %v333_v7  ;;  %v320_v20 = vld [vmem:[%s437_s2 + $0x40] sm:$0x3f]  }
   0x6   :  { %v50_v9 = vmul.f32 %v289_v5, %v288_v8  ;;  %v52_v10 = vsub.f32 1.0, %v288_v8  ;;  %v156_v21 = vsel %vm154_vm1, %v320_v20, 0  ;;  %v321_v30 = vld [vmem:[%s438_s4 + $0x4] ss:$8 sps:$4 sm:$0xff]   ;;  %v323_v31 = vld [vmem:[%s438_s4] ss:$8 sps:$4 sm:$0xff]  }
   0x7   :  { %161 = vmatpush1.bf16.msra.mxu0 %v313_v6  ;;  %228 = vmatprep.subr.bf16.mxu1 %v321_v30  ;;  %v290_v32 = vld [vmem:[%s439_s3] ss:$0 sm:$0xff]  ;;  %v291_v33 = vld [vmem:[%s439_s3 + $0x1] ss:$0 sm:$0xff] }
   0x8   :  { %v51_v11 = vpack.c.bf16 %v50_v9, %v50_v9  ;;  %v53_v12 = vmul.f32 %v289_v5, %v52_v10  ;;  %162 = vmatprep.subr.bf16.mxu0 %v332_v1  ;;  %229 = vmatpush1.bf16.msra.mxu1 %v323_v31  ;;  %v98_v34 = vsel %vm27_vm0, %v290_v32, %v291_v33  ;;  %v202_v43 = vld [vmem:[%s440_s5] sm:$0x3] }
   0x9   :  { %v207_v45 = vrot.slane %v202_v43, %v206_v42  ;;  %v211_v46 = vrot.slane %v202_v43, %v210_v44 }
   0xa   :  { %56 = vrot.lane.b32.xlu0 %v51_v11, %s334_s1  ;;  %v54_v14 = vpack.c.bf16 %v53_v12, %v53_v12 }
   0xb   :  { %163 = vmatpush1.bf16.msra.mxu0 %v314_v13 }
   0xc   :  { %59 = vrot.lane.b32.xlu1 %v54_v14, %s335_s30  ;;  %164 = vmatprep.subr.bf16.mxu0 %v332_v1 }
   0xf   :  { %165 = vmatpush1.bf16.msra.mxu0 %v315_v15 }
  0x10   :  { %166 = vmatprep.subr.bf16.mxu0 %v332_v1 }
  0x13   :  { %167 = vmatpush1.bf16.msra.mxu0 %v316_v16 }
  0x14   :  { %168 = vmatprep.subr.bf16.mxu0 %v332_v1 }
  0x17   :  { %169 = vmatpush1.bf16.msra.mxu0 %v317_v17 }
  0x18   :  { %170 = vmatprep.subr.bf16.mxu0 %v332_v1 }
  0x1b   :  { %171 = vmatpush1.bf16.msra.mxu0 %v318_v18 }
  0x1c   :  { %172 = vmatprep.subr.bf16.mxu0 %v332_v1 }
  0x1f   :  { %173 = vmatpush1.bf16.msra.mxu0 %v319_v19 }
  0x20   :  { %174 = vmatprep.subr.bf16.mxu0 %v332_v1 }
  0x23   :  { %175 = vmatpush1.bf16.msra.mxu0 %v156_v21 }
  0x7e   :  { %v60_v23 = vpop.permute.xlu1 %59 }
  0x7f   :  { %301 = vmatprep.mubr.msk.bf16.mxu0 %vm61_vm2, %v60_v23 }
  0x81   :  { %v32_v24 = vpop.permute.xlu0 %31 }
  0x82   :  { %vm33_vm4 = vcmp.eq.s32.totalorder %v29_v22, %v32_v24 }
  0x83   :  { %vm37_vm5 = vmand %vm33_vm4, %vm34_vm3 }
  0x84   :  { %v287_v25 = vsel %vm37_vm5, 1.0, %v333_v7 }
  0x85   :  { %v40_v26 = vpack.c.bf16 %v287_v25, %v287_v25  ;;  %v57_v27 = vpop.permute.xlu0 %56 }
  0x87   :  { %v64_v28 = vsel %vm61_vm2, %v40_v26, %v57_v27 }
  0x88   :  { %v67_v29 = vsel %vm65_vm6, %v64_v28, %v60_v23 }
  0x89   :  { %191 = vmatmul.mubr.bf16.vlgmr.msra.gmra.mrb[0].mxu0 %v67_v29 }
 0x15c   :  { %v192_v35 = vpop.f32.mrb[0].mxu0 }
 0x15d   :  { %v193_v36 = vadd.f32 %v192_v35, %v98_v34  ;;  %v194_v37 = vpop.f32.mrb[1].mxu0 }
 0x15e   :  { %v195_v38 = vpop.f32.mrb[2].mxu0 }
 0x15f   :  { %v198_v39 = vmax.f32 %v193_v36, 0.0  ;;  %v196_v40 = vpop.f32.mrb[3].mxu0 }
 0x161   :  { %v199_v41 = vpack.c.bf16 %v198_v39, %v198_v39 }
 0x163   :  { %304 = vmatmul.mubr.msk.bf16.vlgmr.msra.gmra.mrb[0].mxu1 %vm224_vm7, %v199_v41 }
 0x236   :  { %v262_v47 = vpop.f32.mrb[0].mxu1 }
 0x237   :  { %v263_v48 = vadd.f32 %v262_v47, %v207_v45  ;;  %v264_v49 = vpop.f32.mrb[1].mxu1 }
 0x238   :  { %v265_v50 = vadd.f32 %v264_v49, %v211_v46  ;;  %v266_v51 = vpop.f32.mrb[2].mxu1 }
 0x239   :  { %v305_v52 = vmul.f32 -1.442695, %v263_v48  ;;  %v267_v53 = vpop.f32.mrb[3].mxu1 }
 0x23a   :  { %v306_v54 = vmul.f32 -1.442695, %v265_v50 }
 0x23b   :  { %324 = vpow2.f32 %v305_v52 }
 0x23c   :  { %326 = vpow2.f32 %v306_v54 }
 0x245   :  { %v325_v55 = vpop.eup %324 }
 0x246   :  { %v327_v56 = vpop.eup %326  ;;  %v275_v57 = vadd.f32 1.0, %v325_v55 }
 0x247   :  { %v276_v58 = vadd.f32 1.0, %v327_v56 }
 0x248   :  { %328 = vrcp.f32 %v275_v57 }
 0x249   :  { %330 = vrcp.f32 %v276_v58 }
 0x252   :  { %v329_v59 = vpop.eup %328 }
 0x253   :  { %v331_v60 = vpop.eup %330  ;;  %281 = vst [vmem:[%s441_s6] sm:$0xff] %v329_v59 }
 0x254   :  { %282 = vst [vmem:[%s441_s6 + $0x8] sm:$0xff] %v331_v60 }

</bundles_post_ra>
